<compile_context>
chip_gen: v6e
topology: v6e:2x2x1
jax: 0.10.0
libtpu: 0.0.40
codegen_flags: <defaults>
</compile_context>

<pallas_src>
import functools

import jax
import jax.numpy as jnp
from jax.experimental import pallas as pl
from jax.experimental.pallas import tpu as pltpu

_SQRT_2_OVER_PI = 0.7978845608028654


def _gelu_tanh(x):
    # tanh-approximate GELU (PyTorch nn.GELU(approximate='tanh')).
    # TODO(synk): nn.GELU() default is exact erf-GELU; tanh form used because erf
    #             lowering is not guaranteed in Mosaic (max abs diff ~3e-3).
    return 0.5 * x * (1.0 + jnp.tanh(_SQRT_2_OVER_PI * (x + 0.044715 * x * x * x)))


def _softplus(x):
    # Numerically stable softplus: max(x, 0) + log(1 + exp(-|x|)).
    return jnp.maximum(x, 0.0) + jnp.log(1.0 + jnp.exp(-jnp.abs(x)))


def gated_head_kernel(x_ref, wf_ref, bf_ref, wg2_ref, bg2_ref, out_ref, *, dout):
    """One grid step = TM flattened (batch*seq) rows.

    Fused-weight columns are [exp | atac | gate_fc1]; packed-output columns are
    [combined | exp | atac | gate].
    """
    x = x_ref[...].astype(jnp.bfloat16)            # per-tile VPU cast (no HBM pre-pass)

    # Single fused projection for all three heads: one MXU pass, f32 accumulate.
    lin = (jnp.dot(x, wf_ref[...], preferred_element_type=jnp.float32)
           + bf_ref[...])                          # (TM, 2*Dout + Hg) f32

    exp_out = _softplus(lin[:, :dout])             # (TM, Dout)
    act = _gelu_tanh(lin[:, dout:])                # one GELU slab: [atac | gate-hidden]
    atac_out = act[:, :dout]                       # (TM, Dout)
    h = act[:, dout:]                              # (TM, Hg)

    # gate_fc2 (Hg -> 1): VPU multiply + lane reduction instead of a skinny matmul.
    g = jnp.sum(h * wg2_ref[...], axis=-1, keepdims=True) + bg2_ref[...]
    gate = jax.nn.sigmoid(g)                       # (TM, 1)

    comb = gate * exp_out + (1.0 - gate) * atac_out

    # Lane-packed output slab, stored once per tile.
    out_ref[...] = jnp.concatenate([comb, exp_out, atac_out, gate], axis=-1)


def _round_up(a, m):
    return ((a + m - 1) // m) * m


def prepare_params(params):
    """One-time weight prep: transpose, pack and cast (hoisted out of forward)."""
    dout = params["w_exp"].shape[0]
    hg = params["w_g1"].shape[0]
    w_fused = jnp.concatenate(
        [params["w_exp"].T, params["w_atac"].T, params["w_g1"].T], axis=1
    ).astype(jnp.bfloat16)                                         # (C, 2*Dout+Hg)
    b_fused = jnp.concatenate(
        [params["b_exp"], params["b_atac"], params["b_g1"]]
    ).reshape(1, -1).astype(jnp.float32)                            # (1, 2*Dout+Hg)
    wg2 = params["w_g2"].reshape(1, hg).astype(jnp.float32)
    bg2 = params["b_g2"].reshape(1, 1).astype(jnp.float32)
    return {"w_fused": w_fused, "b_fused": b_fused, "wg2": wg2, "bg2": bg2,
            "dout": dout, "hg": hg}


def gated_head_forward(x, prepared, *, row_tile=1024,
                       vmem_budget_bytes=12 * 1024 * 1024):
    """JAX/Pallas equivalent of GatedHead.forward(x).

    x: (B, N, C). Returns (combined, exp_out, atac_out, gate) with shapes
    (B, N, Dout) x3 and (B, N, 1), all float32.
    """
    B, N, C = x.shape
    dout = prepared["dout"]
    hg = prepared["hg"]
    wtot = 2 * dout + hg
    outw = 3 * dout + 1
    M = B * N

    # --- row tile selection (primary tuning knob) --------------------------------
    # Double-buffered x tile + packed output tile + (double-buffered) weights must
    # fit the conservative VMEM budget (fits v5e's 16 MiB scoped default and leaves
    # plenty of headroom on v7x's 64 MiB physical VMEM).
    bytes_per_row = 2 * C * x.dtype.itemsize + 2 * outw * 4
    weight_bytes = 2 * (C * wtot * 2 + wtot * 4 + hg * 4 + 4)
    tm_budget = (vmem_budget_bytes - weight_bytes) // max(bytes_per_row, 1)
    tm_budget = max(16, (tm_budget // 16) * 16)
    TM = min(row_tile, _round_up(M, 16), tm_budget)
    num_tiles = pl.cdiv(M, TM)
    # Keep >= 2 grid steps when there is enough work so v7x megacore gets both TCs.
    if num_tiles == 1 and M > 16:
        TM = max(16, _round_up((M + 1) // 2, 16))
        num_tiles = pl.cdiv(M, TM)
    Mp = num_tiles * TM

    x2 = x.reshape(M, C)                      # metadata-only reshape, no cast, no copy
    if Mp != M:
        # Ragged tail only: single small pad pass.
        x2 = jnp.pad(x2, ((0, Mp - M), (0, 0)))

    full = lambda i: (0, 0)
    rows = lambda i: (i, 0)

    packed = pl.pallas_call(
        functools.partial(gated_head_kernel, dout=dout),
        out_shape=jax.ShapeDtypeStruct((Mp, outw), jnp.float32),
        grid_spec=pltpu.PrefetchScalarGridSpec(
            num_scalar_prefetch=0,
            grid=(num_tiles,),
            in_specs=[
                pl.BlockSpec((TM, C), rows),       # x rows (input dtype, cast in-kernel)
                pl.BlockSpec((C, wtot), full),     # fused [W_exp^T | W_atac^T | W_g1^T]
                pl.BlockSpec((1, wtot), full),     # fused [b_exp | b_atac | b_g1]
                pl.BlockSpec((1, hg), full),       # w_gate2 (row vector)
                pl.BlockSpec((1, 1), full),        # b_gate2
            ],
            out_specs=pl.BlockSpec((TM, outw), rows),
        ),
        compiler_params=pltpu.CompilerParams(
            dimension_semantics=("parallel",)),
    )(x2, prepared["w_fused"], prepared["b_fused"], prepared["wg2"], prepared["bg2"])

    out = packed[:M]
    combined = out[:, :dout].reshape(B, N, dout)
    exp_out = out[:, dout:2 * dout].reshape(B, N, dout)
    atac_out = out[:, 2 * dout:3 * dout].reshape(B, N, dout)
    gate = out[:, 3 * dout:].reshape(B, N, 1)
    return combined, exp_out, atac_out, gate


def gated_head_reference(x, params, mirror_kernel_dtypes=False):
    """Pure-JAX reference mirroring the PyTorch GatedHead forward."""
    f32 = jnp.float32
    if mirror_kernel_dtypes:
        def dot(a, w_t):   # same bf16-operand / f32-accumulate path as the kernel
            return jnp.dot(a.astype(jnp.bfloat16), w_t.astype(jnp.bfloat16),
                           preferred_element_type=f32)
    else:
        def dot(a, w_t):
            return jnp.dot(a.astype(f32), w_t.astype(f32),
                           precision=jax.lax.Precision.HIGHEST)

    exp_out = _softplus(dot(x, params["w_exp"].T) + params["b_exp"])
    atac_out = _gelu_tanh(dot(x, params["w_atac"].T) + params["b_atac"])
    h = _gelu_tanh(dot(x, params["w_g1"].T) + params["b_g1"])
    g = (jnp.sum(h * params["w_g2"].reshape(1, 1, -1), axis=-1, keepdims=True)
         + params["b_g2"])
    gate = jax.nn.sigmoid(g)
    combined = gate * exp_out + (1.0 - gate) * atac_out
    return combined, exp_out, atac_out, gate


def make_params(key, embed_dim, gate_hidden_dim, head_out_dim):
    ks = jax.random.split(key, 8)
    s = 0.02
    nrm = lambda k, shape: s * jax.random.normal(k, shape, jnp.float32)
    return {
        "w_exp": nrm(ks[0], (head_out_dim, embed_dim)),
        "b_exp": nrm(ks[1], (head_out_dim,)),
        "w_atac": nrm(ks[2], (head_out_dim, embed_dim)),
        "b_atac": nrm(ks[3], (head_out_dim,)),
        "w_g1": nrm(ks[4], (gate_hidden_dim, embed_dim)),
        "b_g1": nrm(ks[5], (gate_hidden_dim,)),
        "w_g2": nrm(ks[6], (1, gate_hidden_dim)),
        "b_g2": nrm(ks[7], (1,)),
    }


if __name__ == "__main__":
    # Small shapes consistent with GatedHeadConfig (embed_dim, gate_hidden_dim).
    B, N = 2, 16
    EMBED_DIM, GATE_HIDDEN_DIM, HEAD_OUT_DIM = 64, 32, 2

    key = jax.random.PRNGKey(0)
    kx, kp = jax.random.split(key)
    x = jax.random.normal(kx, (B, N, EMBED_DIM), jnp.float32)
    params = make_params(kp, EMBED_DIM, GATE_HIDDEN_DIM, HEAD_OUT_DIM)
    prepared = prepare_params(params)          # one-time weight prep (hoisted)

    outs = gated_head_forward(x, prepared)
    outs = jax.block_until_ready(outs)
    combined, exp_out, atac_out, gate = outs

    assert combined.shape == (B, N, HEAD_OUT_DIM), combined.shape
    assert exp_out.shape == (B, N, HEAD_OUT_DIM), exp_out.shape
    assert atac_out.shape == (B, N, HEAD_OUT_DIM), atac_out.shape
    assert gate.shape == (B, N, 1), gate.shape

    ref_mirror = gated_head_reference(x, params, mirror_kernel_dtypes=True)
    ref_f32 = gated_head_reference(x, params, mirror_kernel_dtypes=False)
    for got, rm, rf, name in zip(outs, ref_mirror, ref_f32,
                                 ("combined", "exp", "atac", "gate")):
        err_m = float(jnp.max(jnp.abs(got - rm)))
        err_f = float(jnp.max(jnp.abs(got - rf)))
        assert jnp.allclose(got, rm, atol=1e-4, rtol=1e-4), (name, err_m)
        assert jnp.allclose(got, rf, atol=2e-2, rtol=2e-2), (name, err_f)

    print("KERNEL_OK")
</pallas_src>

<mosaic_0001>
module attributes {stable_mosaic.version = 11 : i64} {
  func.func @gated_head_kernel(%arg0: i32, %arg1: memref<16x64xf32, #tpu.memory_space<vmem>>, %arg2: memref<64x36xbf16, #tpu.memory_space<vmem>>, %arg3: memref<1x36xf32, #tpu.memory_space<vmem>>, %arg4: memref<1x32xf32, #tpu.memory_space<vmem>>, %arg5: memref<1x1xf32, #tpu.memory_space<vmem>>, %arg6: memref<16x7xf32, #tpu.memory_space<vmem>>) attributes {dimension_semantics = [#tpu.dimension_semantics<parallel>], iteration_bounds = array<i64: 2>, scalar_prefetch = 0 : i64, scratch_operands = 0 : i64, tpu.core_type = #tpu.core_type<tc>, window_params = [{transform_indices = @transform_0, window_bounds = array<i64: 16, 64>}, {pipeline_mode = #tpu.pipeline_mode<synchronous>, transform_indices = @transform_1, window_bounds = array<i64: 64, 36>}, {pipeline_mode = #tpu.pipeline_mode<synchronous>, transform_indices = @transform_2, window_bounds = array<i64: 1, 36>}, {pipeline_mode = #tpu.pipeline_mode<synchronous>, transform_indices = @transform_3, window_bounds = array<i64: 1, 32>}, {pipeline_mode = #tpu.pipeline_mode<synchronous>, transform_indices = @transform_4, window_bounds = array<i64: 1, 1>}, {transform_indices = @transform_5, window_bounds = array<i64: 16, 7>}]} {
    %c0 = arith.constant 0 : index
    %c0_0 = arith.constant 0 : index
    %0 = vector.load %arg1[%c0, %c0_0] : memref<16x64xf32, #tpu.memory_space<vmem>>, vector<16x64xf32>
    %1 = arith.truncf %0 : vector<16x64xf32> to vector<16x64xbf16>
    %c0_1 = arith.constant 0 : index
    %c0_2 = arith.constant 0 : index
    %2 = vector.load %arg2[%c0_1, %c0_2] : memref<64x36xbf16, #tpu.memory_space<vmem>>, vector<64x36xbf16>
    %cst = arith.constant dense<0.000000e+00> : vector<16x36xf32>
    %3 = tpu.matmul %1, %2, %cst {dimension_numbers = #tpu.dot_dimension_numbers<[1], [0], [0], [1], [0, 0, 1, 1], [], []>} : vector<16x64xbf16>, vector<64x36xbf16>, vector<16x36xf32> -> vector<16x36xf32>
    %c0_3 = arith.constant 0 : index
    %c0_4 = arith.constant 0 : index
    %4 = vector.load %arg3[%c0_3, %c0_4] : memref<1x36xf32, #tpu.memory_space<vmem>>, vector<1x36xf32>
    %5 = vector.broadcast %4 : vector<1x36xf32> to vector<16x36xf32>
    %6 = arith.addf %3, %5 : vector<16x36xf32>
    %7 = vector.extract_strided_slice %6 {offsets = [0, 0], sizes = [16, 2], strides = [1, 1]} : vector<16x36xf32> to vector<16x2xf32>
    %cst_5 = arith.constant 0.000000e+00 : f32
    %8 = vector.broadcast %cst_5 : f32 to vector<16x2xf32>
    %9 = arith.maximumf %7, %8 : vector<16x2xf32>
    %10 = math.absf %7 : vector<16x2xf32>
    %cst_6 = arith.constant 0.000000e+00 : f32
    %11 = vector.broadcast %cst_6 : f32 to vector<16x2xf32>
    %12 = arith.subf %11, %10 : vector<16x2xf32>
    %13 = math.exp %12 : vector<16x2xf32>
    %cst_7 = arith.constant 1.000000e+00 : f32
    %14 = vector.broadcast %cst_7 : f32 to vector<16x2xf32>
    %15 = arith.addf %14, %13 : vector<16x2xf32>
    %16 = math.log %15 : vector<16x2xf32>
    %17 = arith.addf %9, %16 : vector<16x2xf32>
    %18 = vector.extract_strided_slice %6 {offsets = [0, 2], sizes = [16, 34], strides = [1, 1]} : vector<16x36xf32> to vector<16x34xf32>
    %cst_8 = arith.constant 5.000000e-01 : f32
    %19 = vector.broadcast %cst_8 : f32 to vector<16x34xf32>
    %20 = arith.mulf %19, %18 : vector<16x34xf32>
    %cst_9 = arith.constant 4.471500e-02 : f32
    %21 = vector.broadcast %cst_9 : f32 to vector<16x34xf32>
    %22 = arith.mulf %21, %18 : vector<16x34xf32>
    %23 = arith.mulf %22, %18 : vector<16x34xf32>
    %24 = arith.mulf %23, %18 : vector<16x34xf32>
    %25 = arith.addf %18, %24 : vector<16x34xf32>
    %cst_10 = arith.constant 0.797884583 : f32
    %26 = vector.broadcast %cst_10 : f32 to vector<16x34xf32>
    %27 = arith.mulf %26, %25 : vector<16x34xf32>
    %28 = math.tanh %27 : vector<16x34xf32>
    %cst_11 = arith.constant 1.000000e+00 : f32
    %29 = vector.broadcast %cst_11 : f32 to vector<16x34xf32>
    %30 = arith.addf %29, %28 : vector<16x34xf32>
    %31 = arith.mulf %20, %30 : vector<16x34xf32>
    %32 = vector.extract_strided_slice %31 {offsets = [0, 0], sizes = [16, 2], strides = [1, 1]} : vector<16x34xf32> to vector<16x2xf32>
    %33 = vector.extract_strided_slice %31 {offsets = [0, 2], sizes = [16, 32], strides = [1, 1]} : vector<16x34xf32> to vector<16x32xf32>
    %c0_12 = arith.constant 0 : index
    %c0_13 = arith.constant 0 : index
    %34 = vector.load %arg4[%c0_12, %c0_13] : memref<1x32xf32, #tpu.memory_space<vmem>>, vector<1x32xf32>
    %35 = vector.broadcast %34 : vector<1x32xf32> to vector<16x32xf32>
    %36 = arith.mulf %33, %35 : vector<16x32xf32>
    %cst_14 = arith.constant dense<0.000000e+00> : vector<16xf32>
    %37 = vector.multi_reduction <add>, %36, %cst_14 [1] : vector<16x32xf32> to vector<16xf32>
    %38 = vector.shape_cast %37 : vector<16xf32> to vector<16x1xf32>
    %c0_15 = arith.constant 0 : index
    %c0_16 = arith.constant 0 : index
    %39 = vector.load %arg5[%c0_15, %c0_16] : memref<1x1xf32, #tpu.memory_space<vmem>>, vector<1x1xf32>
    %40 = vector.broadcast %39 : vector<1x1xf32> to vector<16x1xf32>
    %41 = arith.addf %38, %40 : vector<16x1xf32>
    %42 = arith.negf %41 : vector<16x1xf32>
    %43 = math.exp %42 : vector<16x1xf32>
    %cst_17 = arith.constant 1.000000e+00 : f32
    %44 = vector.broadcast %cst_17 : f32 to vector<16x1xf32>
    %45 = arith.addf %44, %43 : vector<16x1xf32>
    %46 = arith.divf %44, %45 : vector<16x1xf32>
    %47 = vector.broadcast %46 : vector<16x1xf32> to vector<16x2xf32>
    %48 = arith.mulf %47, %17 : vector<16x2xf32>
    %cst_18 = arith.constant 1.000000e+00 : f32
    %49 = vector.broadcast %cst_18 : f32 to vector<16x1xf32>
    %50 = arith.subf %49, %46 : vector<16x1xf32>
    %51 = vector.broadcast %50 : vector<16x1xf32> to vector<16x2xf32>
    %52 = arith.mulf %51, %32 : vector<16x2xf32>
    %53 = arith.addf %48, %52 : vector<16x2xf32>
    %54 = tpu.concatenate %53, %17, %32, %46 in 1 : vector<16x2xf32>, vector<16x2xf32>, vector<16x2xf32>, vector<16x1xf32> -> vector<16x7xf32>
    %c0_19 = arith.constant 0 : index
    %c0_20 = arith.constant 0 : index
    %55 = vector.load %arg6[%c0_19, %c0_20] : memref<16x7xf32, #tpu.memory_space<vmem>>, vector<16x7xf32>
    tpu.vector_store %arg6[%c0_19, %c0_20], %54 {strides = array<i32>} : memref<16x7xf32, #tpu.memory_space<vmem>>, vector<16x7xf32>,
    return
  }
  func.func @transform_0(%arg0: i32) -> (i32, i32) {
    %c0_i32 = arith.constant 0 : i32
    %c0_i32_0 = arith.constant 0 : i32
    return %arg0, %c0_i32 : i32, i32
  }
  func.func @transform_1(%arg0: i32) -> (i32, i32) {
    %c0_i32 = arith.constant 0 : i32
    %c0_i32_0 = arith.constant 0 : i32
    %c0_i32_1 = arith.constant 0 : i32
    return %c0_i32, %c0_i32_0 : i32, i32
  }
  func.func @transform_2(%arg0: i32) -> (i32, i32) {
    %c0_i32 = arith.constant 0 : i32
    %c0_i32_0 = arith.constant 0 : i32
    %c0_i32_1 = arith.constant 0 : i32
    return %c0_i32, %c0_i32_0 : i32, i32
  }
  func.func @transform_3(%arg0: i32) -> (i32, i32) {
    %c0_i32 = arith.constant 0 : i32
    %c0_i32_0 = arith.constant 0 : i32
    %c0_i32_1 = arith.constant 0 : i32
    return %c0_i32, %c0_i32_0 : i32, i32
  }
  func.func @transform_4(%arg0: i32) -> (i32, i32) {
    %c0_i32 = arith.constant 0 : i32
    %c0_i32_0 = arith.constant 0 : i32
    %c0_i32_1 = arith.constant 0 : i32
    return %c0_i32, %c0_i32_0 : i32, i32
  }
  func.func @transform_5(%arg0: i32) -> (i32, i32) {
    %c0_i32 = arith.constant 0 : i32
    %c0_i32_0 = arith.constant 0 : i32
    return %arg0, %c0_i32 : i32, i32
  }
}

</mosaic_0001>

<bundles_post_ra>
// kernel: tpu_custom_call.1
= control target key start
LH: loop header
LB: loop body
LE: loop exit
PB: predicated region body
PF: predicated region fallthrough
CT: control target
= control target key end

     0   :  { %s656_s20 = smov 0   ;;  %s726_s0 = inlined_call_operand.vmem [shape: f32[32,64], index: 0, kind: input, shape index: {}]   ;;  %s727_s1 = inlined_call_operand.vmem [shape: bf16[64,36], index: 1, kind: input, shape index: {}]   ;;  %s728_s2 = inlined_call_operand.vmem [shape: f32[1,36], index: 2, kind: input, shape index: {}]   ;;  %s729_s3 = inlined_call_operand.vmem [shape: f32[1,32], index: 3, kind: input, shape index: {}]   ;;  %s730_s4 = inlined_call_operand.<no memory space> [shape: f32[1,1], index: 4, kind: input, shape index: {}]   ;;  %s731_s5 = inlined_call_operand.vmem [shape: f32[32,7], index: 5, kind: output, shape index: {}]  }
   0x1   :  { %v10_v0 = vstv %s730_s4 }
   0x2   :  { %11 = vst [vmem:[#allocation2] sm:$0x1] %v10_v0 }
   0x3 LB: > { %s527_s21 = sadd.s32 4294967295, %s613_s20   ;;  %p531_p0 = scmp.ge.s32.totalorder %s613_s20, 1  ;;  %s613_s20 = sphi %s656_s20, %s17_s20  }
   0x4   : > { %p190_p1 = scmp.lt.s32.totalorder %s613_s20, 3 }
   0x6   : > { %p191_p2 = pnand %p531_p0, %p190_p1 }
   0x7   : > { %s532_s25 = sshll.u32 (!%p191_p2), %s527_s21, 1  ;;  %s617_s28 = smov (!%p191_p2), 4  }
   0x8   : > { %194 = sbr.rel (%p191_p2) target bundleno = 796 (0x31c), region = 40  ;;  %p219_p3 = scmp.lt.s32.totalorder (!%p191_p2), %s532_s25, 3 }
   0x9   : > { %s618_s14 = smov (!%p191_p2), 124   ;;  %s620_s15 = smov (!%p191_p2), 2  }
   0xa   : > { %s621_s16 = smov (!%p191_p2), 6   ;;  %s622_s17 = smov (!%p191_p2), 126  }
   0xd   : > { %v583_v1 = vld [vmem:[%s727_s1 + $0x18] sm:$0xff]   ;;  %v615_v2 = vmov 0.0   ;;  %v584_v3 = vld [vmem:[%s727_s1 + $0x10] sm:$0xff]   ;;  %vm616_vm0 = vmmov 0   ;;  %v542_v4 = vld [vmem:[%s729_s3] ss:$0 sm:$0xff] }
   0xe   : > { %553 = vmatprep.subr.bf16.mxu0 %v615_v2  ;;  %561 = vmatprep.mubr.msk.bf16.mxu0 %vm616_vm0, %v615_v2  ;;  %s733_s25 = smov (!%p219_p3, %s532_s25), 3  ;;  %v585_v5 = vld [vmem:[%s727_s1 + $0x8] sm:$0xff]   ;;  %v586_v6 = vld [vmem:[%s727_s1] sm:$0xff]   ;;  %vm273_vm1 = vcmask 523264   ;;  %vm373_vm2 = vcmask 261120   ;;  %v619_v42 = vmov 0  }
   0xf   : > { %554 = vmatpush3.bf16.msra.mxu0 %v583_v1  ;;  %360 = vrot.lane.b32.xlu0 %v542_v4, %s617_s28  ;;  %s533_s6 = sshll.u32 %s733_s25, 3  ;;  %v536_v10 = vld [vmem:[%s728_s2] ss:$0 sm:$0xff]  ;;  %vm459_vm3 = vcmask 15360   ;;  %vm462_vm4 = vcmask 31744   ;;  %vm465_vm5 = vcmask 48128  }
  0x10   : > { %555 = vmatprep.subr.bf16.mxu0 %v615_v2  ;;  %s222_s9 = scalar_lea.vmem %s726_s0, %s533_s6  ;;  %581 = vset.pattern.permute.xlu0 %v619_v42  ;;  %v543_v43 = vld [vmem:[#allocation2] ss:$0 sm:$0xff]  ;;  %s228_s21 = scalar_lea.vmem %s731_s5, %s533_s6  ;;  %vm468_vm6 = vcmask 56320  }
  0x11   : > { %v231_v7 = vld [vmem:[%s222_s9] sm:$0xff]  ;;  %v232_v8 = vld [vmem:[%s222_s9 + $0x8] sm:$0xff]  ;;  %582 = vset.pattern.permute.xlu1 %v619_v42 }
  0x12   : > { %v233_v9 = vpack.c.bf16 %v232_v8, %v231_v7 }
  0x13   : > { %556 = vmatpush3.bf16.msra.mxu0 %v584_v3 }
  0x14   : > { %557 = vmatprep.subr.bf16.mxu0 %v615_v2 }
  0x17   : > { %558 = vmatpush3.bf16.msra.mxu0 %v585_v5 }
  0x18   : > { %559 = vmatprep.subr.bf16.mxu0 %v615_v2 }
  0x1b   : > { %560 = vmatpush3.bf16.msra.mxu0 %v586_v6 }
  0x1e   : > { %562 = vmatmul.mubr.msk.bf16.vlgmr.msra.gmra.mxu0 %vm273_vm1, %v233_v9 }
  0x81   : > { %v361_v30 = vpop.permute.xlu0 %360 }
  0xde   : > { %v311_v11 = vpop.f32.mrf.mxu0 }
  0xdf   : > { %v690_v12 = vadd.f32 %v536_v10, %v311_v11 }
  0xe0   : > { %v563_v13 = vpop.f32.mrf.mxu0 }
  0xe1   : > { %v338_v14 = vmul.f32 0.044715, %v690_v12  ;;  %v336_v28 = vmul.f32 0.5, %v690_v12  ;;  %v320_v44 = vand.u32 2147483647, %v690_v12  ;;  %v318_v7 = vmax.f32 %v690_v12, 0.0 }
  0xe2   : > { %v314_v15 = vpop.f32.mrf.mxu0 }
  0xe3   : > { %v693_v16 = vadd.f32 %v536_v10, %v314_v15  ;;  %v340_v17 = vmul.f32 %v338_v14, %v690_v12  ;;  %v322_v48 = vsub.f32 0.0, %v320_v44 }
  0xe4   : > { %v564_v18 = vpop.f32.mrf.mxu0 }
  0xe5   : > { %v342_v19 = vmul.f32 %v340_v17, %v690_v12  ;;  %v339_v20 = vmul.f32 0.044715, %v693_v16  ;;  %v337_v34 = vmul.f32 0.5, %v693_v16  ;;  %v321_v49 = vand.u32 2147483647, %v693_v16 }
  0xe6   : > { %v324_v53 = vmul.f32 1.442695, %v322_v48  ;;  %v319_v10 = vmax.f32 %v693_v16, 0.0 }
  0xe7   : > { %v344_v21 = vadd.f32 %v342_v19, %v690_v12  ;;  %v341_v22 = vmul.f32 %v339_v20, %v693_v16  ;;  %v323_v54 = vsub.f32 0.0, %v321_v49 }
  0xe9   : > { %v346_v23 = vmul.f32 0.7978846, %v344_v21  ;;  %v343_v24 = vmul.f32 %v341_v22, %v693_v16  ;;  %v326_v55 = vmul.f32 1.442695, %v323_v54 }
  0xeb   : > { %587 = vtanh.f32 %v346_v23  ;;  %v345_v25 = vadd.f32 %v343_v24, %v693_v16 }
  0xed   : > { %v347_v26 = vmul.f32 0.7978846, %v345_v25 }
  0xef   : > { %589 = vtanh.f32 %v347_v26 }
  0xf8   : > { %v588_v27 = vpop.eup %587 }
  0xf9   : > { %v350_v29 = vadd.f32 1.0, %v588_v27 }
  0xfb   : > { %v703_v31 = vmul.f32 %v350_v29, %v336_v28 }
  0xfc   : > { %v590_v32 = vpop.eup %589 }
  0xfd   : > { %v363_v33 = vmul.f32 %v361_v30, %v703_v31  ;;  %v351_v35 = vadd.f32 1.0, %v590_v32 }
  0xff   : > { %367 = vrot.lane.b32.xlu0 %v363_v33, %s618_s14  ;;  %v707_v36 = vmul.f32 %v351_v35, %v337_v34 }
 0x101   : > { %v364_v37 = vmul.f32 %v361_v30, %v707_v36 }
 0x103   : > { %369 = vrot.lane.b32.xlu1 %v364_v37, %s618_s14 }
 0x171   : > { %v368_v38 = vpop.permute.xlu0 %367 }
 0x172   : > { %v374_v39 = vsel %vm373_vm2, %v368_v38, 0.0 }
 0x173   : > { %375 = vadd.xlane.f32.xlu1 %v374_v39 }
 0x175   : > { %v370_v40 = vpop.permute.xlu1 %369 }
 0x176   : > { %v377_v41 = vsel %vm373_vm2, %v370_v40, 0.0 }
 0x177   : > { %378 = vadd.xlane.f32.xlu0 %v377_v41 }
 0x1fc   : > { %v376_v45 = vpop.xlane.xlu1 %375 }
 0x1fd   : > { %v387_v46 = vadd.f32 %v543_v43, %v376_v45 }
 0x1ff   : > { %v544_v47 = vmul.f32 -1.442695, %v387_v46 }
 0x200   : > { %v379_v50 = vpop.xlane.xlu0 %378 }
 0x201   : > { %591 = vpow2.f32 %v544_v47  ;;  %v388_v51 = vadd.f32 %v543_v43, %v379_v50 }
 0x203   : > { %v545_v52 = vmul.f32 -1.442695, %v388_v51 }
 0x205   : > { %593 = vpow2.f32 %v545_v52 }
 0x206   : > { %595 = vpow2.f32 %v324_v53 }
 0x207   : > { %597 = vpow2.f32 %v326_v55 }
 0x20e   : > { %v592_v56 = vpop.eup %591 }
 0x20f   : > { %v395_v57 = vadd.f32 1.0, %v592_v56 }
 0x211   : > { %599 = vrcp.f32 %v395_v57 }
 0x212   : > { %v594_v58 = vpop.eup %593 }
 0x213   : > { %v396_v59 = vadd.f32 1.0, %v594_v58  ;;  %v596_v60 = vpop.eup %595 }
 0x214   : > { %v328_v61 = vadd.f32 1.0, %v596_v60  ;;  %v598_v62 = vpop.eup %597 }
 0x215   : > { %601 = vrcp.f32 %v396_v59  ;;  %v329_v63 = vadd.f32 1.0, %v598_v62 }
 0x216   : > { %603 = vlog2.f32 %v328_v61 }
 0x217   : > { %605 = vlog2.f32 %v329_v63 }
 0x21e   : > { %v600_v0 = vpop.eup %599 }
 0x21f   : > { %v413_v1 = vsub.f32 1.0, %v600_v0 }
 0x221   : > { %417 = vperm.xlu0 %581, %v413_v1  }
 0x222   : > { %v602_v2 = vpop.eup %601 }
 0x223   : > { %v414_v3 = vsub.f32 1.0, %v602_v2  ;;  %v604_v4 = vpop.eup %603 }
 0x224   : > { %v331_v5 = vmul.f32 0.6931472, %v604_v4  ;;  %v606_v6 = vpop.eup %605 }
 0x225   : > { %422 = vperm.xlu1 %582, %v414_v3   ;;  %449 = vrot.lane.b32.xlu0 %v707_v36, %s620_s15  ;;  %v333_v9 = vmul.f32 0.6931472, %v606_v6 }
 0x226   : > { %v334_v8 = vadd.f32 %v331_v5, %v318_v7 }
 0x227   : > { %v335_v11 = vadd.f32 %v333_v9, %v319_v10 }
 0x229   : > { %403 = vperm.xlu1 %582, %v600_v0   ;;  %455 = vrot.lane.b32.xlu0 %v602_v2, %s621_s16 }
 0x22d   : > { %408 = vperm.xlu1 %582, %v602_v2  }
 0x231   : > { %439 = vrot.lane.b32.xlu1 %v334_v8, %s620_s15 }
 0x235   : > { %441 = vrot.lane.b32.xlu1 %v335_v11, %s620_s15 }
 0x239   : > { %447 = vrot.lane.b32.xlu1 %v703_v31, %s620_s15 }
 0x29c   : > { %v418_v13 = vpop.permute.xlu0 %417 }
 0x29d   : > { %v425_v14 = vmul.f32 %v418_v13, %v703_v31 }
 0x29f   : > { %429 = vrot.lane.b32.xlu1 %v425_v14, %s622_s17 }
 0x2a0   : > { %v423_v15 = vpop.permute.xlu1 %422  ;;  %v450_v24 = vpop.permute.xlu0 %449 }
 0x2a1   : > { %v426_v17 = vmul.f32 %v423_v15, %v707_v36 }
 0x2a3   : > { %431 = vrot.lane.b32.xlu1 %v426_v17, %s622_s17 }
 0x2a4   : > { %v404_v12 = vpop.permute.xlu1 %403  ;;  %v456_v30 = vpop.permute.xlu0 %455 }
 0x2a5   : > { %v411_v21 = vmul.f32 %v404_v12, %v334_v8 }
 0x2a7   : > { %453 = vrot.lane.b32.xlu1 %v600_v0, %s621_s16 }
 0x2a8   : > { %v409_v18 = vpop.permute.xlu1 %408 }
 0x2a9   : > { %v412_v25 = vmul.f32 %v409_v18, %v335_v11 }
 0x2ac   : > { %v440_v19 = vpop.permute.xlu1 %439 }
 0x2b0   : > { %v442_v20 = vpop.permute.xlu1 %441 }
 0x2b4   : > { %v448_v16 = vpop.permute.xlu1 %447 }
 0x311   : > { %v430_v22 = vpop.permute.xlu1 %429 }
 0x312   : > { %v435_v23 = vadd.f32 %v430_v22, %v411_v21 }
 0x314   : > { %v460_v27 = vsel %vm459_vm3, %v435_v23, %v440_v19 }
 0x315   : > { %v432_v26 = vpop.permute.xlu1 %431  ;;  %v463_v31 = vsel %vm462_vm4, %v460_v27, %v448_v16 }
 0x316   : > { %v436_v28 = vadd.f32 %v432_v26, %v412_v25 }
 0x318   : > { %v461_v29 = vsel %vm459_vm3, %v436_v28, %v442_v20 }
 0x319   : > { %v454_v32 = vpop.permute.xlu1 %453  ;;  %v464_v33 = vsel %vm462_vm4, %v461_v29, %v450_v24 }
 0x31a   : > { %v466_v34 = vsel %vm465_vm5, %v463_v31, %v454_v32  ;;  %v467_v35 = vsel %vm465_vm5, %v464_v33, %v456_v30 }
 0x31b   : > { %469 = vst.msk [vmem:[%s228_s21] sm:$0xff] %vm468_vm6, %v466_v34  ;;  %470 = vst.msk [vmem:[%s228_s21 + $0x8] sm:$0xff] %vm468_vm6, %v467_v35 }
 0x31c PF: > { %s17_s20 = sadd.s32 1, %s613_s20  }
 0x31d   : > { %p14_p4 = scmp.ge.s32.totalorder %s17_s20, 4  }
 0x31f   :  { %16 = sbr.rel (!%p14_p4) target bundleno = 3 (0x3), region = 70 }

</bundles_post_ra>
